<compile_context>
chip_gen: v7x
topology: tpu7x:2x2x1
jax: 0.10.0
libtpu: 0.0.40
codegen_flags: <defaults>
</compile_context>

<pallas_src>
import functools

import jax
import jax.numpy as jnp
from jax import lax
from jax.experimental import pallas as pl
from jax.experimental.pallas import tpu as pltpu


def _contrastive_mask_kernel(noise_ref, mask_ref, *, len_keep, num_k):
    """noise_ref: (tile_b2, l_pad) f32, pairwise-distinct per row, padded lanes=2.0.
    mask_ref: (2, tile_b2, l_pad) f32 output block."""
    tb, l_pad = noise_ref.shape
    noise = noise_ref[...]                                  # (tb, Lp), lane-dense, vreg-resident

    # rank[b, j] = #{ k < num_k : noise[b, k] < noise[b, j] }
    # Values are distinct by construction, so no tie-break compares are needed.
    # Flat static loop over real patches only (padded k lanes carry 2.0 and
    # could never increment a rank anyway -> skipping them is pure savings).
    rank = jnp.zeros((tb, l_pad), dtype=jnp.int32)
    for k in range(num_k):                                  # compile-time trip count
        nk = noise[:, k:k + 1]                              # (tb, 1) static lane pick
        rank = rank + (nk < noise).astype(jnp.int32)        # lane-broadcast compare + add

    # Exactly (num_k - len_keep) ones per row among the real columns.
    mask_1 = (rank >= len_keep).astype(jnp.float32)
    mask_ref[0] = mask_1                                    # rows [0, B/2)
    mask_ref[1] = jnp.float32(1.0) - mask_1                 # rows [B/2, B)


def _pick_tile_b2(b2: int, l_pad: int) -> int:
    """Largest batch tile (multiple of 8, divisor of b2) such that the resident
    (tile, l_pad) noise (f32) + rank (i32) arrays fit comfortably in the 64-vreg
    file; prefer leaving >= 2 grid steps so both v7x TensorCores get work.
    Falls back to the full dim when b2 is not a multiple of 8."""
    if b2 % 8 != 0:
        return b2                                  # block == full dim is always legal
    cap_rows = max(8, (16384 // l_pad) // 8 * 8)   # tile * l_pad <= 16K elements
    cands = [t for t in range(8, min(b2, cap_rows) + 1, 8) if b2 % t == 0]
    if not cands:
        return b2
    multi_step = [t for t in cands if t <= b2 // 2]
    return max(multi_step) if multi_step else max(cands)


def _make_distinct_noise(key, b2, num_patches, l_pad):
    """U[0,1) noise with the column index embedded in the low mantissa bits so
    every row has pairwise-distinct values (tie-free ranking, stable-sort
    semantics preserved); padded lanes get the sentinel 2.0 (> any real value)
    so they never displace a real patch."""
    L = num_patches
    idx_bits = max(1, (L - 1).bit_length())
    if idx_bits > 23:
        raise ValueError("num_patches too large for mantissa index embedding")
    bits = jax.random.bits(key, (b2, L), dtype=jnp.uint32)
    col = jnp.arange(L, dtype=jnp.uint32)[None, :]
    mant = (((bits >> jnp.uint32(9 + idx_bits)) << jnp.uint32(idx_bits)) | col
            | jnp.uint32(0x3F800000))
    noise = lax.bitcast_convert_type(mant, jnp.float32) - jnp.float32(1.0)  # [0, 1)
    if l_pad != L:
        noise = jnp.pad(noise, ((0, 0), (0, l_pad - L)), constant_values=2.0)
    return noise


def spec_batch_contrastive_mask(batch: dict, num_patches: int, key) -> dict:
    spec = batch['spectrogram']
    if spec.shape[0] % 2 != 0:
        raise ValueError('Batch size must be even for contrastive masking.')
    b2 = spec.shape[0] // 2
    L = int(num_patches)

    len_keep = int(L * (1.0 - 0.5))                 # floor, matches MAE get_mask
    l_pad = max(128, ((L + 127) // 128) * 128)      # lane-dense width
    tile_b2 = _pick_tile_b2(b2, l_pad)
    grid = (b2 // tile_b2,)

    # Noise generated once, outside the kernel: reproducible, tiling-invariant,
    # tiny (b2 * l_pad * 4 bytes), and avoids the TPU-only hardware PRNG.
    noise = _make_distinct_noise(key, b2, L, l_pad)

    kernel = functools.partial(_contrastive_mask_kernel,
                               len_keep=len_keep, num_k=L)

    out = pl.pallas_call(
        kernel,
        out_shape=jax.ShapeDtypeStruct((2, b2, l_pad), jnp.float32),
        grid=grid,
        in_specs=[pl.BlockSpec((tile_b2, l_pad), lambda i: (i, 0))],
        out_specs=pl.BlockSpec((2, tile_b2, l_pad), lambda i: (0, i, 0)),
        compiler_params=pltpu.CompilerParams(
            dimension_semantics=("parallel",),
            vmem_limit_bytes=32 * 1024 * 1024,      # safe on v5e/v6e (128 MiB) and v7x (64 MiB)
        ),
        cost_estimate=pl.CostEstimate(
            flops=3 * b2 * l_pad * L,
            transcendentals=0,
            bytes_accessed=3 * b2 * l_pad * 4,
        ),
    )(noise)

    # (2, B/2, Lp) -> (B, Lp) is a free reshape (matches torch.cat order);
    # drop the lane padding.
    mask = out.reshape(2 * b2, l_pad)
    if l_pad != L:
        mask = mask[:, :L]

    out_batch = dict(batch)
    out_batch['mask'] = mask
    return out_batch


if __name__ == "__main__":
    key = jax.random.PRNGKey(0)
    k_spec, k_mask = jax.random.split(key)

    # Small shapes consistent with the module: even batch, num_patches patches.
    B, C, H, W = 8, 1, 16, 16
    num_patches = 16
    spectrogram = jax.random.normal(k_spec, (B, C, H, W), dtype=jnp.float32)
    batch = {'spectrogram': spectrogram}

    out = spec_batch_contrastive_mask(batch, num_patches, k_mask)
    mask = jax.block_until_ready(out['mask'])

    # Sanity checks: binary mask, complementary halves, exactly 50% masked/row.
    b2 = B // 2
    assert mask.shape == (B, num_patches)
    assert bool(jnp.all((mask == 0.0) | (mask == 1.0)))
    assert bool(jnp.all(mask[:b2] + mask[b2:] == 1.0))
    assert bool(jnp.all(jnp.sum(mask, axis=1) == num_patches // 2))
    assert bool(jnp.all(out['spectrogram'] == spectrogram))

    print("KERNEL_OK")
</pallas_src>

<mosaic_0001>
module attributes {stable_mosaic.version = 11 : i64} {
  func.func @_contrastive_mask_kernel(%arg0: i32, %arg1: memref<4x128xf32, #tpu.memory_space<vmem>>, %arg2: memref<2x4x128xf32, #tpu.memory_space<vmem>>) attributes {dimension_semantics = [#tpu.dimension_semantics<parallel>], iteration_bounds = array<i64: 1>, scalar_prefetch = 0 : i64, scratch_operands = 0 : i64, tpu.core_type = #tpu.core_type<tc>, window_params = [{transform_indices = @transform_0, window_bounds = array<i64: 4, 128>}, {transform_indices = @transform_1, window_bounds = array<i64: 2, 4, 128>}]} {
    %c0 = arith.constant 0 : index
    %c0_0 = arith.constant 0 : index
    %0 = vector.load %arg1[%c0, %c0_0] : memref<4x128xf32, #tpu.memory_space<vmem>>, vector<4x128xf32>
    %c0_i32 = arith.constant 0 : i32
    %1 = vector.broadcast %c0_i32 : i32 to vector<4x128xi32>
    %2 = vector.extract_strided_slice %0 {offsets = [0, 0], sizes = [4, 1], strides = [1, 1]} : vector<4x128xf32> to vector<4x1xf32>
    %3 = vector.broadcast %2 : vector<4x1xf32> to vector<4x128xf32>
    %4 = arith.cmpf olt, %3, %0 : vector<4x128xf32>
    %5 = arith.extui %4 : vector<4x128xi1> to vector<4x128xi32>
    %6 = arith.addi %1, %5 : vector<4x128xi32>
    %7 = vector.extract_strided_slice %0 {offsets = [0, 1], sizes = [4, 1], strides = [1, 1]} : vector<4x128xf32> to vector<4x1xf32>
    %8 = vector.broadcast %7 : vector<4x1xf32> to vector<4x128xf32>
    %9 = arith.cmpf olt, %8, %0 : vector<4x128xf32>
    %10 = arith.extui %9 : vector<4x128xi1> to vector<4x128xi32>
    %11 = arith.addi %6, %10 : vector<4x128xi32>
    %12 = vector.extract_strided_slice %0 {offsets = [0, 2], sizes = [4, 1], strides = [1, 1]} : vector<4x128xf32> to vector<4x1xf32>
    %13 = vector.broadcast %12 : vector<4x1xf32> to vector<4x128xf32>
    %14 = arith.cmpf olt, %13, %0 : vector<4x128xf32>
    %15 = arith.extui %14 : vector<4x128xi1> to vector<4x128xi32>
    %16 = arith.addi %11, %15 : vector<4x128xi32>
    %17 = vector.extract_strided_slice %0 {offsets = [0, 3], sizes = [4, 1], strides = [1, 1]} : vector<4x128xf32> to vector<4x1xf32>
    %18 = vector.broadcast %17 : vector<4x1xf32> to vector<4x128xf32>
    %19 = arith.cmpf olt, %18, %0 : vector<4x128xf32>
    %20 = arith.extui %19 : vector<4x128xi1> to vector<4x128xi32>
    %21 = arith.addi %16, %20 : vector<4x128xi32>
    %22 = vector.extract_strided_slice %0 {offsets = [0, 4], sizes = [4, 1], strides = [1, 1]} : vector<4x128xf32> to vector<4x1xf32>
    %23 = vector.broadcast %22 : vector<4x1xf32> to vector<4x128xf32>
    %24 = arith.cmpf olt, %23, %0 : vector<4x128xf32>
    %25 = arith.extui %24 : vector<4x128xi1> to vector<4x128xi32>
    %26 = arith.addi %21, %25 : vector<4x128xi32>
    %27 = vector.extract_strided_slice %0 {offsets = [0, 5], sizes = [4, 1], strides = [1, 1]} : vector<4x128xf32> to vector<4x1xf32>
    %28 = vector.broadcast %27 : vector<4x1xf32> to vector<4x128xf32>
    %29 = arith.cmpf olt, %28, %0 : vector<4x128xf32>
    %30 = arith.extui %29 : vector<4x128xi1> to vector<4x128xi32>
    %31 = arith.addi %26, %30 : vector<4x128xi32>
    %32 = vector.extract_strided_slice %0 {offsets = [0, 6], sizes = [4, 1], strides = [1, 1]} : vector<4x128xf32> to vector<4x1xf32>
    %33 = vector.broadcast %32 : vector<4x1xf32> to vector<4x128xf32>
    %34 = arith.cmpf olt, %33, %0 : vector<4x128xf32>
    %35 = arith.extui %34 : vector<4x128xi1> to vector<4x128xi32>
    %36 = arith.addi %31, %35 : vector<4x128xi32>
    %37 = vector.extract_strided_slice %0 {offsets = [0, 7], sizes = [4, 1], strides = [1, 1]} : vector<4x128xf32> to vector<4x1xf32>
    %38 = vector.broadcast %37 : vector<4x1xf32> to vector<4x128xf32>
    %39 = arith.cmpf olt, %38, %0 : vector<4x128xf32>
    %40 = arith.extui %39 : vector<4x128xi1> to vector<4x128xi32>
    %41 = arith.addi %36, %40 : vector<4x128xi32>
    %42 = vector.extract_strided_slice %0 {offsets = [0, 8], sizes = [4, 1], strides = [1, 1]} : vector<4x128xf32> to vector<4x1xf32>
    %43 = vector.broadcast %42 : vector<4x1xf32> to vector<4x128xf32>
    %44 = arith.cmpf olt, %43, %0 : vector<4x128xf32>
    %45 = arith.extui %44 : vector<4x128xi1> to vector<4x128xi32>
    %46 = arith.addi %41, %45 : vector<4x128xi32>
    %47 = vector.extract_strided_slice %0 {offsets = [0, 9], sizes = [4, 1], strides = [1, 1]} : vector<4x128xf32> to vector<4x1xf32>
    %48 = vector.broadcast %47 : vector<4x1xf32> to vector<4x128xf32>
    %49 = arith.cmpf olt, %48, %0 : vector<4x128xf32>
    %50 = arith.extui %49 : vector<4x128xi1> to vector<4x128xi32>
    %51 = arith.addi %46, %50 : vector<4x128xi32>
    %52 = vector.extract_strided_slice %0 {offsets = [0, 10], sizes = [4, 1], strides = [1, 1]} : vector<4x128xf32> to vector<4x1xf32>
    %53 = vector.broadcast %52 : vector<4x1xf32> to vector<4x128xf32>
    %54 = arith.cmpf olt, %53, %0 : vector<4x128xf32>
    %55 = arith.extui %54 : vector<4x128xi1> to vector<4x128xi32>
    %56 = arith.addi %51, %55 : vector<4x128xi32>
    %57 = vector.extract_strided_slice %0 {offsets = [0, 11], sizes = [4, 1], strides = [1, 1]} : vector<4x128xf32> to vector<4x1xf32>
    %58 = vector.broadcast %57 : vector<4x1xf32> to vector<4x128xf32>
    %59 = arith.cmpf olt, %58, %0 : vector<4x128xf32>
    %60 = arith.extui %59 : vector<4x128xi1> to vector<4x128xi32>
    %61 = arith.addi %56, %60 : vector<4x128xi32>
    %62 = vector.extract_strided_slice %0 {offsets = [0, 12], sizes = [4, 1], strides = [1, 1]} : vector<4x128xf32> to vector<4x1xf32>
    %63 = vector.broadcast %62 : vector<4x1xf32> to vector<4x128xf32>
    %64 = arith.cmpf olt, %63, %0 : vector<4x128xf32>
    %65 = arith.extui %64 : vector<4x128xi1> to vector<4x128xi32>
    %66 = arith.addi %61, %65 : vector<4x128xi32>
    %67 = vector.extract_strided_slice %0 {offsets = [0, 13], sizes = [4, 1], strides = [1, 1]} : vector<4x128xf32> to vector<4x1xf32>
    %68 = vector.broadcast %67 : vector<4x1xf32> to vector<4x128xf32>
    %69 = arith.cmpf olt, %68, %0 : vector<4x128xf32>
    %70 = arith.extui %69 : vector<4x128xi1> to vector<4x128xi32>
    %71 = arith.addi %66, %70 : vector<4x128xi32>
    %72 = vector.extract_strided_slice %0 {offsets = [0, 14], sizes = [4, 1], strides = [1, 1]} : vector<4x128xf32> to vector<4x1xf32>
    %73 = vector.broadcast %72 : vector<4x1xf32> to vector<4x128xf32>
    %74 = arith.cmpf olt, %73, %0 : vector<4x128xf32>
    %75 = arith.extui %74 : vector<4x128xi1> to vector<4x128xi32>
    %76 = arith.addi %71, %75 : vector<4x128xi32>
    %77 = vector.extract_strided_slice %0 {offsets = [0, 15], sizes = [4, 1], strides = [1, 1]} : vector<4x128xf32> to vector<4x1xf32>
    %78 = vector.broadcast %77 : vector<4x1xf32> to vector<4x128xf32>
    %79 = arith.cmpf olt, %78, %0 : vector<4x128xf32>
    %80 = arith.extui %79 : vector<4x128xi1> to vector<4x128xi32>
    %81 = arith.addi %76, %80 : vector<4x128xi32>
    %c8_i32 = arith.constant 8 : i32
    %82 = vector.broadcast %c8_i32 : i32 to vector<4x128xi32>
    %83 = arith.cmpi sge, %81, %82 : vector<4x128xi32>
    %84 = arith.extui %83 : vector<4x128xi1> to vector<4x128xi32>
    %85 = arith.sitofp %84 : vector<4x128xi32> to vector<4x128xf32>
    %c0_1 = arith.constant 0 : index
    %c0_2 = arith.constant 0 : index
    %c0_3 = arith.constant 0 : index
    %86 = vector.load %arg2[%c0_1, %c0_2, %c0_3] : memref<2x4x128xf32, #tpu.memory_space<vmem>>, vector<1x4x128xf32>
    %87 = vector.shape_cast %86 : vector<1x4x128xf32> to vector<4x128xf32>
    %88 = vector.shape_cast %85 : vector<4x128xf32> to vector<1x4x128xf32>
    tpu.vector_store %arg2[%c0_1, %c0_2, %c0_3], %88 {strides = array<i32>} : memref<2x4x128xf32, #tpu.memory_space<vmem>>, vector<1x4x128xf32>,
    %cst = arith.constant 1.000000e+00 : f32
    %89 = vector.broadcast %cst : f32 to vector<4x128xf32>
    %90 = arith.subf %89, %85 : vector<4x128xf32>
    %c1 = arith.constant 1 : index
    %c0_4 = arith.constant 0 : index
    %c0_5 = arith.constant 0 : index
    %91 = vector.load %arg2[%c1, %c0_4, %c0_5] : memref<2x4x128xf32, #tpu.memory_space<vmem>>, vector<1x4x128xf32>
    %92 = vector.shape_cast %91 : vector<1x4x128xf32> to vector<4x128xf32>
    %93 = vector.shape_cast %90 : vector<4x128xf32> to vector<1x4x128xf32>
    tpu.vector_store %arg2[%c1, %c0_4, %c0_5], %93 {strides = array<i32>} : memref<2x4x128xf32, #tpu.memory_space<vmem>>, vector<1x4x128xf32>,
    return
  }
  func.func @transform_0(%arg0: i32) -> (i32, i32) {
    %c0_i32 = arith.constant 0 : i32
    %c0_i32_0 = arith.constant 0 : i32
    return %arg0, %c0_i32 : i32, i32
  }
  func.func @transform_1(%arg0: i32) -> (i32, i32, i32) {
    %c0_i32 = arith.constant 0 : i32
    %c0_i32_0 = arith.constant 0 : i32
    %c0_i32_1 = arith.constant 0 : i32
    return %c0_i32, %arg0, %c0_i32_0 : i32, i32, i32
  }
}

</mosaic_0001>

<bundles_post_ra>
// kernel: tpu_custom_call.1
= control target key start
LH: loop header
LB: loop body
LE: loop exit
PB: predicated region body
PF: predicated region fallthrough
CT: control target
= control target key end

     0   :  { %6 = vsyncpa [#allocation3], 0  ;;  %s351_s0 = inlined_call_operand.hbm [shape: f32[4,128], index: 0, kind: input, shape index: {}]   ;;  %s352_s1 = inlined_call_operand.hbm [shape: f32[2,4,128], index: 1, kind: output, shape index: {}]  }
   0x1   :  { %7 = vsyncpa [#allocation4], 0  ;;  %s245_s6 = smov [#allocation2]   ;;  %s197_s10 = scalar_lea.hbm %s351_s0, 64 }
   0x2   :  { %s14_s7 = sshll.u32 %s245_s6, 4  ;;  %p198_p0 = scmp.ne.s32.totalorder %s351_s0, %s197_s10  ;;  %s15_s7 = int_to_ptr.vmem [resolvable:$true] %s14_s7 }
   0x3   :  { %p201_p1 = scmp.lt.u32.totalorder %s197_s10, %s351_s0 }
   0x5   :  { %p203_p2 = pnand %p201_p1, %p198_p0 }
   0x7   :  { %206 = shalt.err (!%p203_p2)
}
   0x8   :  { %s207_s15 = scalar_lea.vmem %s15_s7, 64  ;;  %p212_p4 = scmp.lt.s32.totalorder %s15_s7, %s15_s7 }
   0x9   :  { %p208_p3 = scmp.ne.s32.totalorder %s15_s7, %s207_s15  ;;  %p213_p5 = scmp.lt.s32.totalorder %s207_s15, %s207_s15 }
   0xb   :  { %p214_p6 = por %p213_p5, %p212_p4 }
   0xd   :  { %p215_p7 = pnand %p214_p6, %p208_p3 }
   0xf   :  { %218 = shalt.err (!%p215_p7)
}
  0x10   :  { %17 = dma.hbm_to_vmem [thread:$0]  %s351_s0, 64, %s15_s7, [#allocation3]  }
  0x11   :  { %241 = dma.done.wait [#allocation3], 64  }
  0x12   :  { %242 = vsyncadd [#allocation3], 4294967232  ;;  %v246_v0 = vmov 2   ;;  %v247_v1 = vmov 0   ;;  %v289_v2 = vld [vmem:[#allocation2] sm:$0xf] }
  0x13   :  { %182 = vset.pattern.permute.xlu1 %v246_v0  ;;  %180 = vset.pattern.permute.xlu0 %v247_v1  ;;  %v248_v3 = vmov 3   ;;  %v249_v4 = vmov 1   ;;  %v250_v5 = vmov 4   ;;  %v251_v6 = vmov 5   ;;  %s262_s0 = smov [#allocation5]  }
  0x14   :  { %37 = vperm.xlu1 %182, %v289_v2   ;;  %24 = vperm.xlu0 %180, %v289_v2   ;;  %v252_v7 = vmov 6   ;;  %v253_v8 = vmov 8   ;;  %v254_v9 = vmov 7   ;;  %v255_v10 = vmov 11   ;;  %s146_s18 = sshll.u32 %s262_s0, 4  ;;  %s147_s18 = int_to_ptr.vmem [resolvable:$true] %s146_s18 }
  0x15   :  { %v256_v11 = vmov 9   ;;  %v257_v12 = vmov 14   ;;  %v258_v13 = vmov 10   ;;  %v259_v14 = vmov 15   ;;  %s219_s19 = scalar_lea.vmem %s147_s18, 128  ;;  %p224_p9 = scmp.lt.s32.totalorder %s147_s18, %s147_s18 }
  0x16   :  { %v260_v15 = vmov 12   ;;  %v261_v16 = vmov 13   ;;  %v263_v0 = vmov 0.0   ;;  %p220_p8 = scmp.ne.s32.totalorder %s147_s18, %s219_s19  ;;  %p225_p10 = scmp.lt.s32.totalorder %s219_s19, %s219_s19 }
  0x18   :  { %183 = vset.pattern.permute.xlu1 %v248_v3  ;;  %181 = vset.pattern.permute.xlu0 %v249_v4  ;;  %p226_p11 = por %p225_p10, %p224_p9 }
  0x19   :  { %44 = vperm.xlu1 %183, %v289_v2   ;;  %30 = vperm.xlu0 %181, %v289_v2  }
  0x1a   :  { %p227_p12 = pnand %p226_p11, %p220_p8 }
  0x1d   :  { %184 = vset.pattern.permute.xlu1 %v250_v5  ;;  %185 = vset.pattern.permute.xlu0 %v251_v6 }
  0x1e   :  { %51 = vperm.xlu1 %184, %v289_v2   ;;  %58 = vperm.xlu0 %185, %v289_v2  }
  0x22   :  { %186 = vset.pattern.permute.xlu1 %v252_v7  ;;  %188 = vset.pattern.permute.xlu0 %v253_v8 }
  0x23   :  { %65 = vperm.xlu1 %186, %v289_v2   ;;  %79 = vperm.xlu0 %188, %v289_v2  }
  0x27   :  { %187 = vset.pattern.permute.xlu1 %v254_v9  ;;  %191 = vset.pattern.permute.xlu0 %v255_v10 }
  0x28   :  { %72 = vperm.xlu1 %187, %v289_v2   ;;  %100 = vperm.xlu0 %191, %v289_v2  }
  0x2c   :  { %189 = vset.pattern.permute.xlu1 %v256_v11  ;;  %194 = vset.pattern.permute.xlu0 %v257_v12 }
  0x2d   :  { %86 = vperm.xlu1 %189, %v289_v2   ;;  %121 = vperm.xlu0 %194, %v289_v2  }
  0x31   :  { %190 = vset.pattern.permute.xlu1 %v258_v13  ;;  %196 = vset.pattern.permute.xlu0 %v259_v14 }
  0x32   :  { %93 = vperm.xlu1 %190, %v289_v2  }
  0x36   :  { %192 = vset.pattern.permute.xlu1 %v260_v15 }
  0x37   :  { %107 = vperm.xlu1 %192, %v289_v2  }
  0x3b   :  { %193 = vset.pattern.permute.xlu1 %v261_v16 }
  0x3c   :  { %114 = vperm.xlu1 %193, %v289_v2  }
  0x40   :  { %195 = vset.pattern.permute.xlu1 %v259_v14 }
  0x41   :  { %128 = vperm.xlu1 %195, %v289_v2  }
  0x93   :  { %v38_v17 = vpop.permute.xlu1 %37  ;;  %v25_v18 = vpop.permute.xlu0 %24 }
  0x94   :  { %vm27_vm0 = vcmp.lt.f32.partialorder %v25_v18, %v289_v2  ;;  %vm40_vm1 = vcmp.lt.f32.partialorder %v38_v17, %v289_v2 }
  0x95   :  { %v28_v19 = vsel %vm27_vm0, 1, %v247_v1  ;;  %v41_v24 = vsel %vm40_vm1, 1, %v247_v1 }
  0x98   :  { %v45_v20 = vpop.permute.xlu1 %44  ;;  %v31_v21 = vpop.permute.xlu0 %30 }
  0x99   :  { %vm33_vm2 = vcmp.lt.f32.partialorder %v31_v21, %v289_v2  ;;  %vm47_vm3 = vcmp.lt.f32.partialorder %v45_v20, %v289_v2 }
  0x9a   :  { %v34_v22 = vsel %vm33_vm2, 1, %v247_v1  ;;  %v48_v28 = vsel %vm47_vm3, 1, %v247_v1 }
  0x9b   :  { %v35_v23 = vadd.s32 %v34_v22, %v28_v19 }
  0x9d   :  { %v42_v25 = vadd.s32 %v41_v24, %v35_v23  ;;  %v52_v26 = vpop.permute.xlu1 %51  ;;  %v59_v27 = vpop.permute.xlu0 %58 }
  0x9e   :  { %vm54_vm4 = vcmp.lt.f32.partialorder %v52_v26, %v289_v2  ;;  %vm61_vm5 = vcmp.lt.f32.partialorder %v59_v27, %v289_v2 }
  0x9f   :  { %v49_v29 = vadd.s32 %v48_v28, %v42_v25  ;;  %v55_v30 = vsel %vm54_vm4, 1, %v247_v1  ;;  %v62_v32 = vsel %vm61_vm5, 1, %v247_v1 }
  0xa1   :  { %v56_v31 = vadd.s32 %v55_v30, %v49_v29 }
  0xa2   :  { %v66_v33 = vpop.permute.xlu1 %65  ;;  %v80_v36 = vpop.permute.xlu0 %79 }
  0xa3   :  { %vm68_vm6 = vcmp.lt.f32.partialorder %v66_v33, %v289_v2  ;;  %v63_v34 = vadd.s32 %v62_v32, %v56_v31  ;;  %vm82_vm8 = vcmp.lt.f32.partialorder %v80_v36, %v289_v2 }
  0xa4   :  { %v69_v35 = vsel %vm68_vm6, 1, %v247_v1  ;;  %v83_v41 = vsel %vm82_vm8, 1, %v247_v1 }
  0xa5   :  { %v70_v38 = vadd.s32 %v69_v35, %v63_v34 }
  0xa7   :  { %v73_v37 = vpop.permute.xlu1 %72  ;;  %v101_v45 = vpop.permute.xlu0 %100 }
  0xa8   :  { %vm75_vm7 = vcmp.lt.f32.partialorder %v73_v37, %v289_v2  ;;  %vm103_vm11 = vcmp.lt.f32.partialorder %v101_v45, %v289_v2 }
  0xa9   :  { %v76_v39 = vsel %vm75_vm7, 1, %v247_v1  ;;  %v104_v50 = vsel %vm103_vm11, 1, %v247_v1 }
  0xaa   :  { %v77_v40 = vadd.s32 %v76_v39, %v70_v38 }
  0xac   :  { %v87_v42 = vpop.permute.xlu1 %86  ;;  %v84_v43 = vadd.s32 %v83_v41, %v77_v40  ;;  %v122_v52 = vpop.permute.xlu0 %121 }
  0xad   :  { %vm89_vm9 = vcmp.lt.f32.partialorder %v87_v42, %v289_v2  ;;  %vm124_vm13 = vcmp.lt.f32.partialorder %v122_v52, %v289_v2 }
  0xae   :  { %v90_v44 = vsel %vm89_vm9, 1, %v247_v1  ;;  %v125_v58 = vsel %vm124_vm13, 1, %v247_v1 }
  0xaf   :  { %v91_v47 = vadd.s32 %v90_v44, %v84_v43 }
  0xb1   :  { %v94_v46 = vpop.permute.xlu1 %93 }
  0xb2   :  { %vm96_vm10 = vcmp.lt.f32.partialorder %v94_v46, %v289_v2 }
  0xb3   :  { %v97_v48 = vsel %vm96_vm10, 1, %v247_v1 }
  0xb4   :  { %v98_v49 = vadd.s32 %v97_v48, %v91_v47 }
  0xb6   :  { %v108_v51 = vpop.permute.xlu1 %107  ;;  %v105_v53 = vadd.s32 %v104_v50, %v98_v49 }
  0xb7   :  { %vm110_vm12 = vcmp.lt.f32.partialorder %v108_v51, %v289_v2 }
  0xb8   :  { %v111_v54 = vsel %vm110_vm12, 1, %v247_v1 }
  0xb9   :  { %v112_v56 = vadd.s32 %v111_v54, %v105_v53 }
  0xbb   :  { %v115_v55 = vpop.permute.xlu1 %114 }
  0xbc   :  { %vm117_vm14 = vcmp.lt.f32.partialorder %v115_v55, %v289_v2 }
  0xbd   :  { %v118_v57 = vsel %vm117_vm14, 1, %v247_v1 }
  0xbe   :  { %v119_v59 = vadd.s32 %v118_v57, %v112_v56 }
  0xc0   :  { %v126_v60 = vadd.s32 %v125_v58, %v119_v59  ;;  %v129_v61 = vpop.permute.xlu1 %128 }
  0xc1   :  { %vm131_vm15 = vcmp.lt.f32.partialorder %v129_v61, %v289_v2 }
  0xc2   :  { %v132_v62 = vsel %vm131_vm15, 1, %v247_v1 }
  0xc3   :  { %v133_v63 = vadd.s32 %v132_v62, %v126_v60 }
  0xc5   :  { %vm134_vm0 = vcmp.ge.s32.totalorder %v133_v63, 8 }
  0xc6   :  { %v158_v3 = vsel %vm134_vm0, 1.0, %v263_v0 }
  0xc7   :  { %137 = vst [vmem:[#allocation5] sm:$0xf] %v158_v3  ;;  %v138_v4 = vsub.f32 1.0, %v158_v3 }
  0xc9   :  { %140 = vst [vmem:[#allocation5 + $0x4] sm:$0xf] %v138_v4 }
  0xca   :  { %230 = shalt.err (!%p227_p12)
}
  0xcb   :  { %s231_s22 = scalar_lea.hbm %s352_s1, 128 }
  0xcc   :  { %p232_p13 = scmp.ne.s32.totalorder %s352_s1, %s231_s22  ;;  %p235_p0 = scmp.lt.u32.totalorder %s231_s22, %s352_s1 }
  0xce   :  { %p237_p1 = pnand %p235_p0, %p232_p13 }
  0xd0   :  { %240 = shalt.err (!%p237_p1)
}
  0xd1   :  { %s264_s27 = smov 64   ;;  %s265_s28 = smov 4  }
  0xd2   :  { %152 = dma.vmem_to_hbm [thread:$0]  %s147_s18, 128, %s352_s1, [#allocation4], %s264_s27, %s264_s27, %s265_s28  }
  0xd3   :  { %243 = dma.done.wait [#allocation4], 128  }
  0xd4   :  { %244 = vsyncadd [#allocation4], 4294967168 }
  0xd5   :  { %156 = vsyncpa [#allocation3], 1 }
  0xd6   :  { %157 = vsyncpa [#allocation4], 1 }

</bundles_post_ra>
